<compile_context>
chip_gen: v7x
topology: tpu7x:2x2x1
jax: 0.10.0
libtpu: 0.0.40
codegen_flags: <defaults>
</compile_context>

<pallas_src>
import jax
import jax.numpy as jnp
from jax.experimental import pallas as pl
from jax.experimental.pallas import tpu as pltpu


def ann_kernel(x_ref, w1_ref, b1_ref, wh_ref, bh_ref, out_ref):
    # fc1 + bias + ReLU (f32 epilogue regardless of MXU input dtype).
    x = x_ref[...]
    h = jnp.dot(x, w1_ref[...], preferred_element_type=jnp.float32) + b1_ref[...]
    h = jnp.maximum(h, 0.0)
    # Fused class|state head: single MXU pass, narrow (tb, C+S) f32 store.
    h = h.astype(wh_ref.dtype)  # bf16 fast path when enabled, no-op for f32
    out_ref[...] = (
        jnp.dot(h, wh_ref[...], preferred_element_type=jnp.float32) + bh_ref[...]
    )


def prepare_ann_params(w1, b1, wc, bc, ws, bs, *, use_bf16=False):
    """One-time parameter prep (hoisted out of the per-forward path).

    Fuses the two heads into a single (H, C+S) weight / (1, C+S) bias and
    optionally casts the MXU-input weights to bf16 (biases stay f32 for the
    f32 epilogue).
    """
    w_head = jnp.concatenate([wc, ws], axis=1)
    b_head = jnp.concatenate([bc, bs], axis=1)
    if use_bf16:
        w1 = w1.astype(jnp.bfloat16)
        w_head = w_head.astype(jnp.bfloat16)
    num_classes = wc.shape[1]
    num_states = ws.shape[1]
    return dict(w1=w1, b1=b1, w_head=w_head, b_head=b_head,
                num_classes=num_classes, num_states=num_states,
                use_bf16=use_bf16)


def ann_forward(x, params, *, block_b=2048):
    B, F = x.shape
    w1, b1 = params["w1"], params["b1"]
    w_head, b_head = params["w_head"], params["b_head"]
    C, S = params["num_classes"], params["num_states"]
    use_bf16 = params["use_bf16"]
    H = w1.shape[1]
    out_w = C + S  # narrow output: exactly the useful columns

    if use_bf16:
        x = x.astype(jnp.bfloat16)

    # --- Batch tiling: sublane-aligned tile; ensure >=2 grid steps for large
    # B so the ("parallel",) axis shards across both v7x TensorCores. ---
    mult = 16 if use_bf16 else 8  # bf16 packs (16,128) per vreg

    def round_up(v, m):
        return ((v + m - 1) // m) * m

    tb = min(block_b, round_up(pl.cdiv(B, 2), mult))
    tb = max(mult, tb)
    b_pad = round_up(B, tb)
    if b_pad != B:
        x = jnp.pad(x, ((0, b_pad - B), (0, 0)))
    nb = b_pad // tb

    out = pl.pallas_call(
        ann_kernel,
        out_shape=jax.ShapeDtypeStruct((b_pad, out_w), jnp.float32),
        grid=(nb,),
        in_specs=[
            pl.BlockSpec((tb, F), lambda i: (i, 0)),        # x: tiled over batch
            pl.BlockSpec((F, H), lambda i: (0, 0)),         # w1: VMEM-resident
            pl.BlockSpec((1, H), lambda i: (0, 0)),         # b1
            pl.BlockSpec((H, out_w), lambda i: (0, 0)),     # fused head weight
            pl.BlockSpec((1, out_w), lambda i: (0, 0)),     # fused head bias
        ],
        out_specs=pl.BlockSpec((tb, out_w), lambda i: (i, 0)),
        compiler_params=pltpu.CompilerParams(
            dimension_semantics=("parallel",)),
    )(x, w1, b1, w_head, b_head)

    # Strip batch padding and split the two heads (only C+S=7 columns now).
    return out[:B, :C], out[:B, C:C + S]


if __name__ == "__main__":
    # Small, module-consistent shapes: batch=8, input_size=32, hidden=64,
    # num_classes=4, num_states=3.
    B, F, H, C, S = 8, 32, 64, 4, 3

    key = jax.random.PRNGKey(0)
    kx, k1, k2, k3, k4, k5, k6 = jax.random.split(key, 7)

    x = jax.random.normal(kx, (B, F), dtype=jnp.float32)

    # Deterministic parameter init (uniform, roughly PyTorch Linear scale).
    def init_linear(kw, kb, fan_in, fan_out):
        bound = 1.0 / jnp.sqrt(fan_in)
        w = jax.random.uniform(kw, (fan_in, fan_out), jnp.float32, -bound, bound)
        b = jax.random.uniform(kb, (1, fan_out), jnp.float32, -bound, bound)
        return w, b

    w1, b1 = init_linear(k1, k2, F, H)
    wc, bc = init_linear(k3, k4, H, C)
    ws, bs = init_linear(k5, k6, H, S)

    # Reference in plain JAX.
    def ref_fwd(xv):
        h_ref = jnp.maximum(xv @ w1 + b1, 0.0)
        return h_ref @ wc + bc, h_ref @ ws + bs

    # --- f32 path (default): tight tolerance. ---
    params_f32 = prepare_ann_params(w1, b1, wc, bc, ws, bs, use_bf16=False)
    class_pred, state_pred = ann_forward(x, params_f32)
    jax.block_until_ready((class_pred, state_pred))
    cls_ref, st_ref = ref_fwd(x)
    assert class_pred.shape == (B, C) and state_pred.shape == (B, S)
    assert jnp.allclose(class_pred, cls_ref, atol=1e-5)
    assert jnp.allclose(state_pred, st_ref, atol=1e-5)

    # --- Larger, non-multiple-of-8 batch: exercises padding and nb >= 2. ---
    B2 = 300
    x2 = jax.random.normal(jax.random.PRNGKey(1), (B2, F), dtype=jnp.float32)
    c2, s2 = ann_forward(x2, params_f32)
    jax.block_until_ready((c2, s2))
    c2_ref, s2_ref = ref_fwd(x2)
    assert c2.shape == (B2, C) and s2.shape == (B2, S)
    assert jnp.allclose(c2, c2_ref, atol=1e-5)
    assert jnp.allclose(s2, s2_ref, atol=1e-5)

    # --- bf16 MXU-input fast path (v5e/v6e/v7x): loose tolerance. ---
    params_bf16 = prepare_ann_params(w1, b1, wc, bc, ws, bs, use_bf16=True)
    cb, sb = ann_forward(x2, params_bf16)
    jax.block_until_ready((cb, sb))
    assert jnp.allclose(cb, c2_ref, atol=5e-2, rtol=5e-2)
    assert jnp.allclose(sb, s2_ref, atol=5e-2, rtol=5e-2)

    print("KERNEL_OK")
</pallas_src>

<mosaic_0001>
module attributes {stable_mosaic.version = 11 : i64} {
  func.func @ann_kernel(%arg0: i32, %arg1: memref<8x32xf32, #tpu.memory_space<vmem>>, %arg2: memref<32x64xf32, #tpu.memory_space<vmem>>, %arg3: memref<1x64xf32, #tpu.memory_space<vmem>>, %arg4: memref<64x7xf32, #tpu.memory_space<vmem>>, %arg5: memref<1x7xf32, #tpu.memory_space<vmem>>, %arg6: memref<8x7xf32, #tpu.memory_space<vmem>>) attributes {dimension_semantics = [#tpu.dimension_semantics<parallel>], iteration_bounds = array<i64: 1>, scalar_prefetch = 0 : i64, scratch_operands = 0 : i64, tpu.core_type = #tpu.core_type<tc>, window_params = [{transform_indices = @transform_0, window_bounds = array<i64: 8, 32>}, {pipeline_mode = #tpu.pipeline_mode<synchronous>, transform_indices = @transform_1, window_bounds = array<i64: 32, 64>}, {pipeline_mode = #tpu.pipeline_mode<synchronous>, transform_indices = @transform_2, window_bounds = array<i64: 1, 64>}, {pipeline_mode = #tpu.pipeline_mode<synchronous>, transform_indices = @transform_3, window_bounds = array<i64: 64, 7>}, {pipeline_mode = #tpu.pipeline_mode<synchronous>, transform_indices = @transform_4, window_bounds = array<i64: 1, 7>}, {transform_indices = @transform_5, window_bounds = array<i64: 8, 7>}]} {
    %c0 = arith.constant 0 : index
    %c0_0 = arith.constant 0 : index
    %0 = vector.load %arg1[%c0, %c0_0] : memref<8x32xf32, #tpu.memory_space<vmem>>, vector<8x32xf32>
    %c0_1 = arith.constant 0 : index
    %c0_2 = arith.constant 0 : index
    %1 = vector.load %arg2[%c0_1, %c0_2] : memref<32x64xf32, #tpu.memory_space<vmem>>, vector<32x64xf32>
    %cst = arith.constant dense<0.000000e+00> : vector<8x64xf32>
    %2 = tpu.matmul %0, %1, %cst {dimension_numbers = #tpu.dot_dimension_numbers<[1], [0], [0], [1], [0, 0, 1, 1], [], []>} : vector<8x32xf32>, vector<32x64xf32>, vector<8x64xf32> -> vector<8x64xf32>
    %c0_3 = arith.constant 0 : index
    %c0_4 = arith.constant 0 : index
    %3 = vector.load %arg3[%c0_3, %c0_4] : memref<1x64xf32, #tpu.memory_space<vmem>>, vector<1x64xf32>
    %4 = vector.broadcast %3 : vector<1x64xf32> to vector<8x64xf32>
    %5 = arith.addf %2, %4 : vector<8x64xf32>
    %cst_5 = arith.constant 0.000000e+00 : f32
    %6 = vector.broadcast %cst_5 : f32 to vector<8x64xf32>
    %7 = arith.maximumf %5, %6 : vector<8x64xf32>
    %c0_6 = arith.constant 0 : index
    %c0_7 = arith.constant 0 : index
    %8 = vector.load %arg4[%c0_6, %c0_7] : memref<64x7xf32, #tpu.memory_space<vmem>>, vector<64x7xf32>
    %cst_8 = arith.constant dense<0.000000e+00> : vector<8x7xf32>
    %9 = tpu.matmul %7, %8, %cst_8 {dimension_numbers = #tpu.dot_dimension_numbers<[1], [0], [0], [1], [0, 0, 1, 1], [], []>} : vector<8x64xf32>, vector<64x7xf32>, vector<8x7xf32> -> vector<8x7xf32>
    %c0_9 = arith.constant 0 : index
    %c0_10 = arith.constant 0 : index
    %10 = vector.load %arg5[%c0_9, %c0_10] : memref<1x7xf32, #tpu.memory_space<vmem>>, vector<1x7xf32>
    %11 = vector.broadcast %10 : vector<1x7xf32> to vector<8x7xf32>
    %12 = arith.addf %9, %11 : vector<8x7xf32>
    %c0_11 = arith.constant 0 : index
    %c0_12 = arith.constant 0 : index
    %13 = vector.load %arg6[%c0_11, %c0_12] : memref<8x7xf32, #tpu.memory_space<vmem>>, vector<8x7xf32>
    tpu.vector_store %arg6[%c0_11, %c0_12], %12 {strides = array<i32>} : memref<8x7xf32, #tpu.memory_space<vmem>>, vector<8x7xf32>,
    return
  }
  func.func @transform_0(%arg0: i32) -> (i32, i32) {
    %c0_i32 = arith.constant 0 : i32
    %c0_i32_0 = arith.constant 0 : i32
    return %arg0, %c0_i32 : i32, i32
  }
  func.func @transform_1(%arg0: i32) -> (i32, i32) {
    %c0_i32 = arith.constant 0 : i32
    %c0_i32_0 = arith.constant 0 : i32
    %c0_i32_1 = arith.constant 0 : i32
    return %c0_i32, %c0_i32_0 : i32, i32
  }
  func.func @transform_2(%arg0: i32) -> (i32, i32) {
    %c0_i32 = arith.constant 0 : i32
    %c0_i32_0 = arith.constant 0 : i32
    %c0_i32_1 = arith.constant 0 : i32
    return %c0_i32, %c0_i32_0 : i32, i32
  }
  func.func @transform_3(%arg0: i32) -> (i32, i32) {
    %c0_i32 = arith.constant 0 : i32
    %c0_i32_0 = arith.constant 0 : i32
    %c0_i32_1 = arith.constant 0 : i32
    return %c0_i32, %c0_i32_0 : i32, i32
  }
  func.func @transform_4(%arg0: i32) -> (i32, i32) {
    %c0_i32 = arith.constant 0 : i32
    %c0_i32_0 = arith.constant 0 : i32
    %c0_i32_1 = arith.constant 0 : i32
    return %c0_i32, %c0_i32_0 : i32, i32
  }
  func.func @transform_5(%arg0: i32) -> (i32, i32) {
    %c0_i32 = arith.constant 0 : i32
    %c0_i32_0 = arith.constant 0 : i32
    return %arg0, %c0_i32 : i32, i32
  }
}

</mosaic_0001>

<bundles_post_ra>
// kernel: tpu_custom_call.1
= control target key start
LH: loop header
LB: loop body
LE: loop exit
PB: predicated region body
PF: predicated region fallthrough
CT: control target
= control target key end

     0   :  { %v307_v3 = vmov 0.0|0.0   ;;  %vm308_vm0 = vmmov 0   ;;  %v309_v6 = vmov 0.0   ;;  %s398_s0 = inlined_call_operand.vmem [shape: f32[8,32], index: 0, kind: input, shape index: {}]   ;;  %s399_s1 = inlined_call_operand.vmem [shape: f32[32,64], index: 1, kind: input, shape index: {}]   ;;  %s400_s2 = inlined_call_operand.vmem [shape: f32[1,64], index: 2, kind: input, shape index: {}]   ;;  %s401_s3 = inlined_call_operand.vmem [shape: f32[64,7], index: 3, kind: input, shape index: {}]   ;;  %s402_s4 = inlined_call_operand.vmem [shape: f32[1,7], index: 4, kind: input, shape index: {}]   ;;  %s403_s5 = inlined_call_operand.hbm [shape: f32[8,7], index: 5, kind: output, shape index: {}]  }
   0x1   :  { %v22_v0 = vld [vmem:[%s399_s1] sm:$0xff]  ;;  %v23_v1 = vld [vmem:[%s399_s1 + $0x8] sm:$0xff]  ;;  %v24_v2 = vld [vmem:[%s399_s1 + $0x10] sm:$0xff]  ;;  %261 = vmatprep.subr.bf16.mxu0 %v307_v3  ;;  %239 = vmatprep.mubr.msk.f32.mxu0 %vm308_vm0, %v309_v6 }
   0x2   :  { %v262_v4 = vpack.c.bf16 %v23_v1, %v22_v0  ;;  %v25_v5 = vld [vmem:[%s399_s1 + $0x18] sm:$0xff]  ;;  %v108_v7 = vld [vmem:[%s401_s3] sm:$0xff]  ;;  %267 = vmatprep.subr.bf16.mxu1 %v307_v3  ;;  %v109_v8 = vld [vmem:[%s401_s3 + $0x8] sm:$0xff]  ;;  %258 = vmatprep.mubr.msk.f32.mxu1 %vm308_vm0, %v309_v6 }
   0x3   :  { %v110_v9 = vld [vmem:[%s401_s3 + $0x10] sm:$0xff]  ;;  %v111_v10 = vld [vmem:[%s401_s3 + $0x18] sm:$0xff]  ;;  %v265_v11 = vpack.c.bf16 %v25_v5, %v24_v2  ;;  %v268_v12 = vpack.c.bf16 %v109_v8, %v108_v7 }
   0x4   :  { %263 = vmatpush3.bf16.msra.mxu0 %v262_v4 }
   0x5   :  { %264 = vmatprep.subr.bf16.mxu0 %v307_v3 }
   0x6   :  { %10 = vsyncpa [#allocation3], 0  ;;  %269 = vmatpush3.bf16.msra.mxu1 %v268_v12  ;;  %v271_v13 = vpack.c.bf16 %v111_v10, %v110_v9  ;;  %v112_v14 = vld [vmem:[%s401_s3 + $0x20] sm:$0xff]  ;;  %v113_v15 = vld [vmem:[%s401_s3 + $0x28] sm:$0xff]  ;;  %vm33_vm1 = vcmask 261120   ;;  %vm123_vm2 = vcmask 523264  }
   0x7   :  { %270 = vmatprep.subr.bf16.mxu1 %v307_v3  ;;  %v21_v16 = vld [vmem:[%s398_s0] sm:$0xff]  ;;  %v274_v17 = vpack.c.bf16 %v113_v15, %v112_v14  ;;  %v114_v18 = vld [vmem:[%s401_s3 + $0x30] sm:$0xff]  ;;  %v115_v19 = vld [vmem:[%s401_s3 + $0x38] sm:$0xff]  ;;  %s310_s21 = smov [#allocation2]   ;;  %vm197_vm3 = vcmask 56320  }
   0x8   :  { %266 = vmatpush3.bf16.msra.mxu0 %v265_v11  ;;  %v277_v20 = vpack.c.bf16 %v115_v19, %v114_v18  ;;  %v213_v21 = vld [vmem:[%s400_s2] ss:$0 sm:$0xff]  ;;  %s205_s22 = sshll.u32 %s310_s21, 4  ;;  %s206_s22 = int_to_ptr.vmem [resolvable:$true] %s205_s22 }
   0x9   :  { %v215_v26 = vld [vmem:[%s402_s4] ss:$0 sm:$0xff]  ;;  %s283_s3 = scalar_lea.vmem %s206_s22, 128  ;;  %p288_p1 = scmp.lt.s32.totalorder %s206_s22, %s206_s22 }
   0xa   :  { %272 = vmatpush3.bf16.msra.mxu1 %v271_v13  ;;  %p284_p0 = scmp.ne.s32.totalorder %s206_s22, %s283_s3  ;;  %p289_p2 = scmp.lt.s32.totalorder %s283_s3, %s283_s3 }
   0xb   :  { %240 = vmatmul.mubr.msk.f32.vlgmr.msra.gmra.mrb[0].mxu0 %vm33_vm1, %v21_v16  ;;  %273 = vmatprep.subr.bf16.mxu1 %v307_v3 }
   0xc   :  { %p290_p3 = por %p289_p2, %p288_p1 }
   0xe   :  { %275 = vmatpush3.bf16.msra.mxu1 %v274_v17  ;;  %p291_p4 = pnand %p290_p3, %p284_p0 }
   0xf   :  { %276 = vmatprep.subr.bf16.mxu1 %v307_v3 }
  0x12   :  { %278 = vmatpush3.bf16.msra.mxu1 %v277_v20 }
  0xde   :  { %v103_v22 = vpop.f32.mrb[0].mxu0 }
  0xdf   :  { %v104_v23 = vadd.f32 %v213_v21, %v103_v22  ;;  %v241_v24 = vpop.f32.mrb[1].mxu0 }
  0xe1   :  { %v107_v25 = vmax.f32 %v104_v23, 0.0 }
  0xe3   :  { %259 = vmatmul.mubr.msk.f32.vlgmr.msra.gmra.mrb[0].mxu1 %vm123_vm2, %v107_v25 }
 0x1b6   :  { %v193_v27 = vpop.f32.mrb[0].mxu1 }
 0x1b7   :  { %v194_v28 = vadd.f32 %v215_v26, %v193_v27  ;;  %v260_v29 = vpop.f32.mrb[1].mxu1 }
 0x1b9   :  { %198 = vst.msk [vmem:[#allocation2] sm:$0xff] %vm197_vm3, %v194_v28 }
 0x1ba   :  { %294 = shalt.err (!%p291_p4)
}
 0x1bb   :  { %s295_s24 = scalar_lea.hbm %s403_s5, 128 }
 0x1bc   :  { %p296_p5 = scmp.ne.s32.totalorder %s403_s5, %s295_s24  ;;  %p299_p6 = scmp.lt.u32.totalorder %s295_s24, %s403_s5 }
 0x1be   :  { %p301_p7 = pnand %p299_p6, %p296_p5 }
 0x1c0   :  { %304 = shalt.err (!%p301_p7)
}
 0x1c1   :  { %208 = dma.vmem_to_hbm [thread:$0]  %s206_s22, 128, %s403_s5, [#allocation3]  }
 0x1c2   :  { %305 = dma.done.wait [#allocation3], 128  }
 0x1c3   :  { %306 = vsyncadd [#allocation3], 4294967168 }
 0x1c4   :  { %212 = vsyncpa [#allocation3], 1 }

</bundles_post_ra>
